<compile_context>
chip_gen: v7x
topology: tpu7x:2x2x1
jax: 0.10.0
libtpu: 0.0.40
codegen_flags: <defaults>
</compile_context>

<pallas_src>
import jax
import jax.numpy as jnp
from jax.experimental import pallas as pl
from jax.experimental.pallas import tpu as pltpu


def _pos_enc_kernel(table_ref, out_ref):
    # table_ref: (1, tile_w)      flat slice of the embedding table
    #            (positions are arange(seq_len), so the "gather" is contiguous)
    # out_ref:   (batch, tile_w)  same slice broadcast over batch (lane-dense store)
    out_ref[...] = jnp.broadcast_to(table_ref[...], out_ref.shape)


def _choose_tile_w(batch, seq_len, embed_dim, itemsize,
                   target_out_block_bytes=2 << 20,
                   vmem_budget_bytes=24 << 20):
    """Pick a tile width (elements along the fused seq*dim axis).

    Returns the largest 128-divisible tile (so stores are unmasked) whose
    double-buffered input + output blocks fit the VMEM budget, preferring
    output blocks of at most ~2 MiB; None if no 128-divisible tiling exists.
    """
    candidates = []
    for ts in range(1, seq_len + 1):
        if seq_len % ts:
            continue
        w = ts * embed_dim
        if w % 128 != 0:
            continue  # lane-sparse store; skip (full-extent fallback handles it)
        # double-buffered input tile + double-buffered (batch-wide) output block
        if 2 * w * itemsize + 2 * batch * w * itemsize > vmem_budget_bytes:
            continue
        candidates.append(w)
    if not candidates:
        return None
    under = [w for w in candidates if batch * w * itemsize <= target_out_block_bytes]
    return max(under) if under else min(candidates)


def learnable_positional_encoding(x, table):
    """position_embedding(arange(seq_len)) broadcast to [batch, seq_len, embed_dim].

    x:     [batch, seq_len, embed_dim]  (only the shape is used, as in the module)
    table: [max_len, embed_dim]         learnable nn.Embedding weights
    """
    batch, seq_len, embed_dim = x.shape
    max_len, table_dim = table.shape
    assert table_dim == embed_dim, "table embed_dim must match x"
    assert seq_len <= max_len, "seq_len exceeds max_len of the positional table"

    itemsize = jnp.dtype(table.dtype).itemsize
    full_w = seq_len * embed_dim

    tile_w = _choose_tile_w(batch, seq_len, embed_dim, itemsize)
    if tile_w is not None:
        # Contiguous (free) reshape: rows of the table become a flat lane axis.
        table_flat = table.reshape(1, max_len * embed_dim)
    else:
        # No 128-divisible tiling of the fused axis exists (odd seq*dim): use a
        # single full-extent block over exactly the rows we need, which is always
        # layout-legal. The slice is tiny relative to the batch-wide output.
        # TODO(synk): stream in chunks if batch*seq_len*embed_dim ever outgrows
        # the VMEM budget in this (rare) non-128-divisible branch.
        tile_w = full_w
        table_flat = jax.lax.slice(table, (0, 0), (seq_len, embed_dim)).reshape(1, full_w)

    grid = (full_w // tile_w,)

    out_flat = pl.pallas_call(
        _pos_enc_kernel,
        out_shape=jax.ShapeDtypeStruct((batch, full_w), table.dtype),
        grid_spec=pltpu.PrefetchScalarGridSpec(
            num_scalar_prefetch=0,
            grid=grid,
            in_specs=[
                # Block index s selects columns [s*tile_w, (s+1)*tile_w) of the
                # flattened table == rows [s*tile_s, (s+1)*tile_s) of the table.
                pl.BlockSpec((1, tile_w), lambda s: (0, s)),
            ],
            out_specs=pl.BlockSpec((batch, tile_w), lambda s: (0, s)),
        ),
        compiler_params=pltpu.CompilerParams(
            dimension_semantics=("parallel",),        # shards seq tiles across v7x TCs
            vmem_limit_bytes=32 * 1024 * 1024,        # lift v5e's 16 MiB scoped default
        ),
        cost_estimate=pl.CostEstimate(
            flops=0,
            transcendentals=0,
            bytes_accessed=(1 + batch) * full_w * itemsize,  # 1 table read + batch writes
        ),
    )(table_flat)

    return out_flat.reshape(batch, seq_len, embed_dim)


if __name__ == "__main__":
    # Small shapes consistent with the module's forward: x is [batch, seq_len, embed_dim].
    batch_size, seq_len, embed_dim = 2, 16, 32
    max_len = 64  # module default is 5000; small value for the synthetic test

    key = jax.random.PRNGKey(0)
    k_x, k_tab = jax.random.split(key)

    x = jax.random.normal(k_x, (batch_size, seq_len, embed_dim), dtype=jnp.float32)
    # nn.Embedding initializes weights ~ N(0, 1); deterministic synthetic init here.
    table = jax.random.normal(k_tab, (max_len, embed_dim), dtype=jnp.float32)

    out = learnable_positional_encoding(x, table)
    out = jax.block_until_ready(out)

    # Reference check: output == table[:seq_len] broadcast over batch.
    ref = jnp.broadcast_to(table[:seq_len][None, :, :], (batch_size, seq_len, embed_dim))
    assert out.shape == (batch_size, seq_len, embed_dim)
    assert jnp.allclose(out, ref), "Pallas output mismatch vs reference"

    print("KERNEL_OK")
</pallas_src>

<mosaic_0001>
module attributes {stable_mosaic.version = 11 : i64} {
  func.func @_pos_enc_kernel(%arg0: i32, %arg1: memref<1x512xf32, #tpu.memory_space<vmem>>, %arg2: memref<2x512xf32, #tpu.memory_space<vmem>>) attributes {dimension_semantics = [#tpu.dimension_semantics<parallel>], iteration_bounds = array<i64: 1>, scalar_prefetch = 0 : i64, scratch_operands = 0 : i64, tpu.core_type = #tpu.core_type<tc>, window_params = [{transform_indices = @transform_0, window_bounds = array<i64: 1, 512>}, {transform_indices = @transform_1, window_bounds = array<i64: 2, 512>}]} {
    %c0 = arith.constant 0 : index
    %c0_0 = arith.constant 0 : index
    %0 = vector.load %arg1[%c0, %c0_0] : memref<1x512xf32, #tpu.memory_space<vmem>>, vector<1x512xf32>
    %1 = vector.shape_cast %0 : vector<1x512xf32> to vector<1x512xf32>
    %2 = vector.broadcast %1 : vector<1x512xf32> to vector<2x512xf32>
    %c0_1 = arith.constant 0 : index
    %c0_2 = arith.constant 0 : index
    %3 = vector.load %arg2[%c0_1, %c0_2] : memref<2x512xf32, #tpu.memory_space<vmem>>, vector<2x512xf32>
    tpu.vector_store %arg2[%c0_1, %c0_2], %2 {strides = array<i32>} : memref<2x512xf32, #tpu.memory_space<vmem>>, vector<2x512xf32>,
    return
  }
  func.func @transform_0(%arg0: i32) -> (i32, i32) {
    %c0_i32 = arith.constant 0 : i32
    %c0_i32_0 = arith.constant 0 : i32
    return %c0_i32, %arg0 : i32, i32
  }
  func.func @transform_1(%arg0: i32) -> (i32, i32) {
    %c0_i32 = arith.constant 0 : i32
    %c0_i32_0 = arith.constant 0 : i32
    return %c0_i32, %arg0 : i32, i32
  }
}

</mosaic_0001>

<bundles_post_ra>
// kernel: tpu_custom_call.1
= control target key start
LH: loop header
LB: loop body
LE: loop exit
PB: predicated region body
PF: predicated region fallthrough
CT: control target
= control target key end

     0   :  { %6 = vsyncpa [#allocation3], 0  ;;  %s164_s0 = inlined_call_operand.hbm [shape: f32[1,2048], index: 0, kind: input, shape index: {}]   ;;  %s165_s1 = inlined_call_operand.hbm [shape: f32[2,512], index: 1, kind: output, shape index: {}]  }
   0x1   :  { %7 = vsyncpa [#allocation4], 0  ;;  %s124_s6 = smov [#allocation2]   ;;  %s76_s10 = scalar_lea.hbm %s164_s0, 64 }
   0x2   :  { %s14_s7 = sshll.u32 %s124_s6, 4  ;;  %p77_p0 = scmp.ne.s32.totalorder %s164_s0, %s76_s10  ;;  %s15_s7 = int_to_ptr.vmem [resolvable:$true] %s14_s7 }
   0x3   :  { %s78_s15 = scalar_lea.hbm %s164_s0, 256  ;;  %p80_p2 = scmp.lt.u32.totalorder %s76_s10, %s164_s0 }
   0x4   :  { %p79_p1 = scmp.lt.u32.totalorder %s78_s15, %s76_s10 }
   0x6   :  { %p81_p3 = por %p80_p2, %p79_p1 }
   0x8   :  { %p82_p4 = pnand %p81_p3, %p77_p0 }
   0xa   :  { %85 = shalt.err (!%p82_p4)
}
   0xb   :  { %s86_s18 = scalar_lea.vmem %s15_s7, 64  ;;  %p91_p6 = scmp.lt.s32.totalorder %s15_s7, %s15_s7 }
   0xc   :  { %p87_p5 = scmp.ne.s32.totalorder %s15_s7, %s86_s18  ;;  %p92_p7 = scmp.lt.s32.totalorder %s86_s18, %s86_s18 }
   0xe   :  { %p93_p8 = por %p92_p7, %p91_p6 }
  0x10   :  { %p94_p9 = pnand %p93_p8, %p87_p5 }
  0x12   :  { %97 = shalt.err (!%p94_p9)
}
  0x13   :  { %17 = dma.hbm_to_vmem [thread:$0]  %s164_s0, 64, %s15_s7, [#allocation3]  }
  0x14   :  { %120 = dma.done.wait [#allocation3], 64  }
  0x15   :  { %121 = vsyncadd [#allocation3], 4294967232  ;;  %v23_v0 = vlaneseq  ;;  %v125_v1 = vmov 1983009808   ;;  %v21_v9 = vld [vmem:[#allocation2] sm:$0xf] }
  0x16   :  { %v42_v2 = vunpack.c.l.s4 %v125_v1  ;;  %s126_s0 = smov [#allocation5]  }
  0x17   :  { %v24_v3 = vshrl.u32 %v23_v0, 7  ;;  %s64_s21 = sshll.u32 %s126_s0, 4  ;;  %s65_s21 = int_to_ptr.vmem [resolvable:$true] %s64_s21 }
  0x18   :  { %v43_v4 = vunpack.c.0.s8 %v42_v2  ;;  %s98_s22 = scalar_lea.vmem %s65_s21, 128  ;;  %p103_p11 = scmp.lt.s32.totalorder %s65_s21, %s65_s21 }
  0x19   :  { %v25_v5 = vsub.s32 0, %v24_v3  ;;  %v29_v6 = vsub.s32 1, %v24_v3  ;;  %v33_v7 = vsub.s32 2, %v24_v3  ;;  %v37_v8 = vsub.s32 3, %v24_v3  ;;  %p99_p10 = scmp.ne.s32.totalorder %s65_s21, %s98_s22  ;;  %p104_p12 = scmp.lt.s32.totalorder %s98_s22, %s98_s22 }
  0x1a   :  { %v46_v10 = vsub.s32 %v43_v4, %v24_v3 }
  0x1b   :  { %v26_v11 = vrot.slane %v21_v9, %v25_v5  ;;  %v30_v12 = vrot.slane %v21_v9, %v29_v6  ;;  %v34_v13 = vrot.slane %v21_v9, %v33_v7  ;;  %v38_v14 = vrot.slane %v21_v9, %v37_v8  ;;  %p105_p13 = por %p104_p12, %p103_p11 }
  0x1d   :  { %v39_v15 = vcombine.low %v26_v11, %v30_v12  ;;  %v40_v16 = vcombine.low %v34_v13, %v38_v14  ;;  %p106_p0 = pnand %p105_p13, %p99_p10 }
  0x1f   :  { %v47_v17 = vrot.slane %v39_v15, %v46_v10  ;;  %v54_v18 = vrot.slane %v40_v16, %v46_v10 }
  0x21   :  { %v55_v19 = vcombine.low %v47_v17, %v54_v18 }
  0x23   :  { %57 = vst [vmem:[#allocation5] sm:$0xff] %v55_v19 }
  0x24   :  { %109 = shalt.err (!%p106_p0)
}
  0x25   :  { %s110_s25 = scalar_lea.hbm %s165_s1, 128 }
  0x26   :  { %p111_p1 = scmp.ne.s32.totalorder %s165_s1, %s110_s25  ;;  %p114_p2 = scmp.lt.u32.totalorder %s110_s25, %s165_s1 }
  0x28   :  { %p116_p3 = pnand %p114_p2, %p111_p1 }
  0x2a   :  { %119 = shalt.err (!%p116_p3)
}
  0x2b   :  { %67 = dma.vmem_to_hbm [thread:$0]  %s65_s21, 128, %s165_s1, [#allocation4]  }
  0x2c   :  { %122 = dma.done.wait [#allocation4], 128  }
  0x2d   :  { %123 = vsyncadd [#allocation4], 4294967168 }
  0x2e   :  { %71 = vsyncpa [#allocation3], 1 }
  0x2f   :  { %72 = vsyncpa [#allocation4], 1 }

</bundles_post_ra>
